<compile_context>
chip_gen: v5e
topology: v5e:2x2
jax: 0.10.0
libtpu: 0.0.40
codegen_flags: <defaults>
</compile_context>

<pallas_src>
import jax
import jax.numpy as jnp
from jax.experimental import pallas as pl
from jax.experimental.pallas import tpu as pltpu


def _round_up(n, m):
    return ((n + m - 1) // m) * m


# -----------------------------------------------------------------------------
# Fused kernel.
#   x_ref    : (TB, L, C)   bf16   batch tile of embedded text
#   wc_ref   : (FS, C, Fp)  bf16   conv taps; banks concatenated on the F axis,
#                                  zero-padded to FS = max(filter_sizes), Fp=128
#   bc_ref   : (1, Fp)      f32    conv bias (0 on padding columns)
#   vlen_ref : (1, Fp)      int32  per-column valid conv length  L - fs + 1
#   wf_ref   : (Fp, Op)     bf16   FC weight (zero padded)
#   bf_ref   : (1, Op)      f32    FC bias (zero padded)
#   o_ref    : (1, TB, Op)  f32    logits for this batch tile
# -----------------------------------------------------------------------------
def _cnn1d_fused_kernel(x_ref, wc_ref, bc_ref, vlen_ref, wf_ref, bf_ref, o_ref):
    tb, L, C = x_ref.shape
    fs_max = wc_ref.shape[0]
    f_pad = wc_ref.shape[2]

    # Aligned full-length slab (no unaligned per-tap slice/reshape).
    xs = x_ref[...].reshape(tb * L, C)                       # bf16, layout-free

    # Conv1d = sum over taps k of one aligned MXU matmul, realigned in time by
    # an XLU sublane roll:  acc[t] += z_k[t + k].  Rows wrapped by the roll
    # only land on time positions that are masked out below.
    acc = jnp.zeros((tb * L, f_pad), jnp.float32)
    for k in range(fs_max):                                  # small static unroll
        z = jnp.dot(xs, wc_ref[k], preferred_element_type=jnp.float32)
        if k:
            z = pltpu.roll(z, shift=tb * L - k, axis=0)      # z[t] <- z[t + k]
        acc = acc + z

    # Mask invalid time positions per bank (each bank keeps its own l_out),
    # then global max-pool over time.
    acc = acc.reshape(tb, L, f_pad)
    t_idx = jax.lax.broadcasted_iota(jnp.int32, (tb, L, f_pad), 1)
    acc = jnp.where(t_idx < vlen_ref[0][None, None, :], acc, -jnp.inf)
    pooled = jnp.max(acc, axis=1)                            # (TB, Fp)

    # Bias + ReLU after the pool (bias is time-constant, ReLU monotone).
    pooled = jnp.maximum(pooled + bc_ref[0][None, :], 0.0)

    # Fused FC epilogue (dropout is identity in eval mode).
    o_ref[0] = (
        jnp.dot(pooled.astype(jnp.bfloat16), wf_ref[...],
                preferred_element_type=jnp.float32)
        + bf_ref[0][None, :]
    )


# -----------------------------------------------------------------------------
# Parameters (PyTorch layout) and the fused / padded kernel operands.
# -----------------------------------------------------------------------------
def init_params(key, n_filters, filter_sizes, output_dim, in_channels=128):
    keys = jax.random.split(key, 2 * len(filter_sizes) + 2)
    convs = []
    for i, fs in enumerate(filter_sizes):
        # PyTorch Conv1d weight layout: (out_channels, in_channels, fs)
        w = 0.05 * jax.random.normal(keys[2 * i], (n_filters, in_channels, fs),
                                     dtype=jnp.float32)
        b = 0.01 * jax.random.normal(keys[2 * i + 1], (n_filters,),
                                     dtype=jnp.float32)
        convs.append((w, b))
    d = len(filter_sizes) * n_filters
    fc_w = 0.05 * jax.random.normal(keys[-2], (output_dim, d), dtype=jnp.float32)
    fc_b = 0.01 * jax.random.normal(keys[-1], (output_dim,), dtype=jnp.float32)
    return {"convs": convs, "fc_w": fc_w, "fc_b": fc_b}


def fuse_params(params, seq_len):
    """Concatenate + zero-pad all banks / FC to lane-dense, bf16 operands."""
    convs = params["convs"]
    fs_list = [w.shape[2] for w, _ in convs]
    fs_max = max(fs_list)
    C = convs[0][0].shape[1]
    f_total = sum(w.shape[0] for w, _ in convs)
    out_dim = params["fc_w"].shape[0]
    f_pad = _round_up(f_total, 128)
    o_pad = _round_up(out_dim, 128)

    wc = jnp.zeros((fs_max, C, f_pad), jnp.float32)
    bc = jnp.zeros((1, f_pad), jnp.float32)
    vlen = jnp.ones((1, f_pad), jnp.int32)      # padding cols: 1 valid (zero) pos
    col = 0
    for (w, b), fs in zip(convs, fs_list):
        nf = w.shape[0]
        wc = wc.at[:fs, :, col:col + nf].set(jnp.transpose(w, (2, 1, 0)))
        bc = bc.at[0, col:col + nf].set(b)
        vlen = vlen.at[0, col:col + nf].set(seq_len - fs + 1)
        col += nf

    wf = jnp.zeros((f_pad, o_pad), jnp.float32)
    wf = wf.at[:f_total, :out_dim].set(params["fc_w"].T)
    bf = jnp.zeros((1, o_pad), jnp.float32)
    bf = bf.at[0, :out_dim].set(params["fc_b"])

    return {
        "wc": wc.astype(jnp.bfloat16), "bc": bc, "vlen": vlen,
        "wf": wf.astype(jnp.bfloat16), "bf": bf,
        "out_dim": out_dim,
    }


# -----------------------------------------------------------------------------
# Forward pass: one fused pallas_call, batch grid marked "parallel".
# -----------------------------------------------------------------------------
def cnn1d_forward(fused, x):
    B, L, C = x.shape
    wc, bc, vlen = fused["wc"], fused["bc"], fused["vlen"]
    wf, bf = fused["wf"], fused["bf"]
    fs_max, _, f_pad = wc.shape
    o_pad = wf.shape[1]
    assert L >= fs_max, "sequence shorter than the largest filter"

    # Batch tile: >=2 grid steps whenever B >= 2 (v7x megacore sharding);
    # 8-row tiles for larger batches keep the sublane dim aligned.
    tb = 8 if (B >= 16 and B % 8 == 0 and L % 8 == 0) else 1
    nb = B // tb

    out = pl.pallas_call(
        _cnn1d_fused_kernel,
        out_shape=jax.ShapeDtypeStruct((nb, tb, o_pad), jnp.float32),
        grid=(nb,),
        in_specs=[
            pl.BlockSpec((tb, L, C), lambda i: (i, 0, 0)),
            pl.BlockSpec((fs_max, C, f_pad), lambda i: (0, 0, 0)),
            pl.BlockSpec((1, f_pad), lambda i: (0, 0)),
            pl.BlockSpec((1, f_pad), lambda i: (0, 0)),
            pl.BlockSpec((f_pad, o_pad), lambda i: (0, 0)),
            pl.BlockSpec((1, o_pad), lambda i: (0, 0)),
        ],
        out_specs=pl.BlockSpec((1, tb, o_pad), lambda i: (i, 0, 0)),
        compiler_params=pltpu.CompilerParams(
            dimension_semantics=("parallel",)),
    )(x.astype(jnp.bfloat16), wc, bc, vlen, wf, bf)

    return out.reshape(B, o_pad)[:, :fused["out_dim"]]


# -----------------------------------------------------------------------------
# Pure-JAX reference (mirrors the kernel's precision policy: bf16 MXU inputs,
# f32 accumulation) for the correctness check.
# -----------------------------------------------------------------------------
def cnn1d_reference(params, x):
    B, L, _ = x.shape
    xb = x.astype(jnp.bfloat16).astype(jnp.float32)
    pooled = []
    for w, b in params["convs"]:                       # w: (F, C, fs)
        wb = w.astype(jnp.bfloat16).astype(jnp.float32)
        F_, C, fs = w.shape
        l_out = L - fs + 1
        acc = jnp.zeros((B, l_out, F_), jnp.float32)
        for k in range(fs):
            acc = acc + jnp.einsum("blc,fc->blf", xb[:, k:k + l_out, :], wb[:, :, k])
        acc = jax.nn.relu(acc + b[None, None, :])
        pooled.append(jnp.max(acc, axis=1))
    cat = jnp.concatenate(pooled, axis=1)
    catb = cat.astype(jnp.bfloat16).astype(jnp.float32)
    wfb = params["fc_w"].astype(jnp.bfloat16).astype(jnp.float32)
    return catb @ wfb.T + params["fc_b"][None, :]


if __name__ == "__main__":
    # TODO(synk): fastText string lookup (self.lookup) is host-side and not a
    # TPU kernel; the kernel takes embedded vectors (B, L, 128) directly.
    B, L, C = 2, 16, 128          # batch, sequence length, embedding dim
    n_filters = 8
    filter_sizes = [3, 4, 5]
    output_dim = 4

    key = jax.random.PRNGKey(0)
    kx, kp = jax.random.split(key)
    x = jax.random.normal(kx, (B, L, C), dtype=jnp.float32)
    params = init_params(kp, n_filters, filter_sizes, output_dim, in_channels=C)
    fused = fuse_params(params, seq_len=L)

    out = cnn1d_forward(fused, x)
    out = jax.block_until_ready(out)

    ref = cnn1d_reference(params, x)
    assert out.shape == (B, output_dim), out.shape
    assert jnp.allclose(out, ref, atol=3e-3, rtol=3e-3), (out, ref)

    print("KERNEL_OK")
</pallas_src>

<mosaic_0001>
module attributes {stable_mosaic.version = 11 : i64} {
  func.func @_cnn1d_fused_kernel(%arg0: i32, %arg1: memref<1x16x128xbf16, #tpu.memory_space<vmem>>, %arg2: memref<5x128x128xbf16, #tpu.memory_space<vmem>>, %arg3: memref<1x128xf32, #tpu.memory_space<vmem>>, %arg4: memref<1x128xi32, #tpu.memory_space<vmem>>, %arg5: memref<128x128xbf16, #tpu.memory_space<vmem>>, %arg6: memref<1x128xf32, #tpu.memory_space<vmem>>, %arg7: memref<1x1x128xf32, #tpu.memory_space<vmem>>) attributes {dimension_semantics = [#tpu.dimension_semantics<parallel>], iteration_bounds = array<i64: 2>, scalar_prefetch = 0 : i64, scratch_operands = 0 : i64, tpu.core_type = #tpu.core_type<tc>, window_params = [{transform_indices = @transform_0, window_bounds = array<i64: 1, 16, 128>}, {pipeline_mode = #tpu.pipeline_mode<synchronous>, transform_indices = @transform_1, window_bounds = array<i64: 5, 128, 128>}, {pipeline_mode = #tpu.pipeline_mode<synchronous>, transform_indices = @transform_2, window_bounds = array<i64: 1, 128>}, {pipeline_mode = #tpu.pipeline_mode<synchronous>, transform_indices = @transform_3, window_bounds = array<i64: 1, 128>}, {pipeline_mode = #tpu.pipeline_mode<synchronous>, transform_indices = @transform_4, window_bounds = array<i64: 128, 128>}, {pipeline_mode = #tpu.pipeline_mode<synchronous>, transform_indices = @transform_5, window_bounds = array<i64: 1, 128>}, {transform_indices = @transform_6, window_bounds = array<i64: 1, 1, 128>}]} {
    %c0 = arith.constant 0 : index
    %c0_0 = arith.constant 0 : index
    %c0_1 = arith.constant 0 : index
    %0 = vector.load %arg1[%c0, %c0_0, %c0_1] : memref<1x16x128xbf16, #tpu.memory_space<vmem>>, vector<1x16x128xbf16>
    %1 = vector.shape_cast %0 : vector<1x16x128xbf16> to vector<16x128xbf16>
    %cst = arith.constant 0.000000e+00 : f32
    %2 = vector.broadcast %cst : f32 to vector<16x128xf32>
    %c0_2 = arith.constant 0 : index
    %c0_3 = arith.constant 0 : index
    %c0_4 = arith.constant 0 : index
    %3 = vector.load %arg2[%c0_2, %c0_3, %c0_4] : memref<5x128x128xbf16, #tpu.memory_space<vmem>>, vector<1x128x128xbf16>
    %4 = vector.shape_cast %3 : vector<1x128x128xbf16> to vector<128x128xbf16>
    %cst_5 = arith.constant dense<0.000000e+00> : vector<16x128xf32>
    %5 = tpu.matmul %1, %4, %cst_5 {dimension_numbers = #tpu.dot_dimension_numbers<[1], [0], [0], [1], [0, 0, 1, 1], [], []>} : vector<16x128xbf16>, vector<128x128xbf16>, vector<16x128xf32> -> vector<16x128xf32>
    %6 = arith.addf %2, %5 : vector<16x128xf32>
    %c1 = arith.constant 1 : index
    %c0_6 = arith.constant 0 : index
    %c0_7 = arith.constant 0 : index
    %7 = vector.load %arg2[%c1, %c0_6, %c0_7] : memref<5x128x128xbf16, #tpu.memory_space<vmem>>, vector<1x128x128xbf16>
    %8 = vector.shape_cast %7 : vector<1x128x128xbf16> to vector<128x128xbf16>
    %cst_8 = arith.constant dense<0.000000e+00> : vector<16x128xf32>
    %9 = tpu.matmul %1, %8, %cst_8 {dimension_numbers = #tpu.dot_dimension_numbers<[1], [0], [0], [1], [0, 0, 1, 1], [], []>} : vector<16x128xbf16>, vector<128x128xbf16>, vector<16x128xf32> -> vector<16x128xf32>
    %c15_i32 = arith.constant 15 : i32
    %10 = tpu.dynamic_rotate %9 by %c15_i32 dim 0 : vector<16x128xf32>, i32 -> vector<16x128xf32>
    %11 = arith.addf %6, %10 : vector<16x128xf32>
    %c2 = arith.constant 2 : index
    %c0_9 = arith.constant 0 : index
    %c0_10 = arith.constant 0 : index
    %12 = vector.load %arg2[%c2, %c0_9, %c0_10] : memref<5x128x128xbf16, #tpu.memory_space<vmem>>, vector<1x128x128xbf16>
    %13 = vector.shape_cast %12 : vector<1x128x128xbf16> to vector<128x128xbf16>
    %cst_11 = arith.constant dense<0.000000e+00> : vector<16x128xf32>
    %14 = tpu.matmul %1, %13, %cst_11 {dimension_numbers = #tpu.dot_dimension_numbers<[1], [0], [0], [1], [0, 0, 1, 1], [], []>} : vector<16x128xbf16>, vector<128x128xbf16>, vector<16x128xf32> -> vector<16x128xf32>
    %c14_i32 = arith.constant 14 : i32
    %15 = tpu.dynamic_rotate %14 by %c14_i32 dim 0 : vector<16x128xf32>, i32 -> vector<16x128xf32>
    %16 = arith.addf %11, %15 : vector<16x128xf32>
    %c3 = arith.constant 3 : index
    %c0_12 = arith.constant 0 : index
    %c0_13 = arith.constant 0 : index
    %17 = vector.load %arg2[%c3, %c0_12, %c0_13] : memref<5x128x128xbf16, #tpu.memory_space<vmem>>, vector<1x128x128xbf16>
    %18 = vector.shape_cast %17 : vector<1x128x128xbf16> to vector<128x128xbf16>
    %cst_14 = arith.constant dense<0.000000e+00> : vector<16x128xf32>
    %19 = tpu.matmul %1, %18, %cst_14 {dimension_numbers = #tpu.dot_dimension_numbers<[1], [0], [0], [1], [0, 0, 1, 1], [], []>} : vector<16x128xbf16>, vector<128x128xbf16>, vector<16x128xf32> -> vector<16x128xf32>
    %c13_i32 = arith.constant 13 : i32
    %20 = tpu.dynamic_rotate %19 by %c13_i32 dim 0 : vector<16x128xf32>, i32 -> vector<16x128xf32>
    %21 = arith.addf %16, %20 : vector<16x128xf32>
    %c4 = arith.constant 4 : index
    %c0_15 = arith.constant 0 : index
    %c0_16 = arith.constant 0 : index
    %22 = vector.load %arg2[%c4, %c0_15, %c0_16] : memref<5x128x128xbf16, #tpu.memory_space<vmem>>, vector<1x128x128xbf16>
    %23 = vector.shape_cast %22 : vector<1x128x128xbf16> to vector<128x128xbf16>
    %cst_17 = arith.constant dense<0.000000e+00> : vector<16x128xf32>
    %24 = tpu.matmul %1, %23, %cst_17 {dimension_numbers = #tpu.dot_dimension_numbers<[1], [0], [0], [1], [0, 0, 1, 1], [], []>} : vector<16x128xbf16>, vector<128x128xbf16>, vector<16x128xf32> -> vector<16x128xf32>
    %c12_i32 = arith.constant 12 : i32
    %25 = tpu.dynamic_rotate %24 by %c12_i32 dim 0 : vector<16x128xf32>, i32 -> vector<16x128xf32>
    %26 = arith.addf %21, %25 : vector<16x128xf32>
    %27 = vector.shape_cast %26 : vector<16x128xf32> to vector<1x16x128xf32>
    %28 = tpu.iota {dimensions = array<i32: 1>} : vector<1x16x128xi32>
    %c0_18 = arith.constant 0 : index
    %c0_19 = arith.constant 0 : index
    %29 = vector.load %arg4[%c0_18, %c0_19] : memref<1x128xi32, #tpu.memory_space<vmem>>, vector<1x128xi32>
    %30 = vector.shape_cast %29 : vector<1x128xi32> to vector<128xi32>
    %31 = vector.shape_cast %30 : vector<128xi32> to vector<1x1x128xi32>
    %32 = vector.broadcast %31 : vector<1x1x128xi32> to vector<1x16x128xi32>
    %33 = arith.cmpi slt, %28, %32 : vector<1x16x128xi32>
    %cst_20 = arith.constant 0xFF800000 : f32
    %34 = vector.broadcast %cst_20 : f32 to vector<1x16x128xf32>
    %35 = arith.select %33, %27, %34 : vector<1x16x128xi1>, vector<1x16x128xf32>
    %cst_21 = arith.constant dense<0xFF800000> : vector<1x128xf32>
    %36 = vector.multi_reduction <maximumf>, %35, %cst_21 [1] : vector<1x16x128xf32> to vector<1x128xf32>
    %c0_22 = arith.constant 0 : index
    %c0_23 = arith.constant 0 : index
    %37 = vector.load %arg3[%c0_22, %c0_23] : memref<1x128xf32, #tpu.memory_space<vmem>>, vector<1x128xf32>
    %38 = vector.shape_cast %37 : vector<1x128xf32> to vector<128xf32>
    %39 = vector.shape_cast %38 : vector<128xf32> to vector<1x128xf32>
    %40 = arith.addf %36, %39 : vector<1x128xf32>
    %cst_24 = arith.constant 0.000000e+00 : f32
    %41 = vector.broadcast %cst_24 : f32 to vector<1x128xf32>
    %42 = arith.maximumf %40, %41 : vector<1x128xf32>
    %43 = arith.truncf %42 : vector<1x128xf32> to vector<1x128xbf16>
    %c0_25 = arith.constant 0 : index
    %c0_26 = arith.constant 0 : index
    %44 = vector.load %arg5[%c0_25, %c0_26] : memref<128x128xbf16, #tpu.memory_space<vmem>>, vector<128x128xbf16>
    %cst_27 = arith.constant dense<0.000000e+00> : vector<1x128xf32>
    %45 = tpu.matmul %43, %44, %cst_27 {dimension_numbers = #tpu.dot_dimension_numbers<[1], [0], [0], [1], [0, 0, 1, 1], [], []>} : vector<1x128xbf16>, vector<128x128xbf16>, vector<1x128xf32> -> vector<1x128xf32>
    %c0_28 = arith.constant 0 : index
    %c0_29 = arith.constant 0 : index
    %46 = vector.load %arg6[%c0_28, %c0_29] : memref<1x128xf32, #tpu.memory_space<vmem>>, vector<1x128xf32>
    %47 = vector.shape_cast %46 : vector<1x128xf32> to vector<128xf32>
    %48 = vector.shape_cast %47 : vector<128xf32> to vector<1x128xf32>
    %49 = arith.addf %45, %48 : vector<1x128xf32>
    %c0_30 = arith.constant 0 : index
    %c0_31 = arith.constant 0 : index
    %c0_32 = arith.constant 0 : index
    %50 = vector.load %arg7[%c0_30, %c0_31, %c0_32] : memref<1x1x128xf32, #tpu.memory_space<vmem>>, vector<1x1x128xf32>
    %51 = vector.shape_cast %50 : vector<1x1x128xf32> to vector<1x128xf32>
    %52 = vector.shape_cast %49 : vector<1x128xf32> to vector<1x1x128xf32>
    tpu.vector_store %arg7[%c0_30, %c0_31, %c0_32], %52 {strides = array<i32>} : memref<1x1x128xf32, #tpu.memory_space<vmem>>, vector<1x1x128xf32>,
    return
  }
  func.func @transform_0(%arg0: i32) -> (i32, i32, i32) {
    %c0_i32 = arith.constant 0 : i32
    %c0_i32_0 = arith.constant 0 : i32
    %c0_i32_1 = arith.constant 0 : i32
    return %arg0, %c0_i32, %c0_i32_0 : i32, i32, i32
  }
  func.func @transform_1(%arg0: i32) -> (i32, i32, i32) {
    %c0_i32 = arith.constant 0 : i32
    %c0_i32_0 = arith.constant 0 : i32
    %c0_i32_1 = arith.constant 0 : i32
    %c0_i32_2 = arith.constant 0 : i32
    return %c0_i32, %c0_i32_0, %c0_i32_1 : i32, i32, i32
  }
  func.func @transform_2(%arg0: i32) -> (i32, i32) {
    %c0_i32 = arith.constant 0 : i32
    %c0_i32_0 = arith.constant 0 : i32
    %c0_i32_1 = arith.constant 0 : i32
    return %c0_i32, %c0_i32_0 : i32, i32
  }
  func.func @transform_3(%arg0: i32) -> (i32, i32) {
    %c0_i32 = arith.constant 0 : i32
    %c0_i32_0 = arith.constant 0 : i32
    %c0_i32_1 = arith.constant 0 : i32
    return %c0_i32, %c0_i32_0 : i32, i32
  }
  func.func @transform_4(%arg0: i32) -> (i32, i32) {
    %c0_i32 = arith.constant 0 : i32
    %c0_i32_0 = arith.constant 0 : i32
    %c0_i32_1 = arith.constant 0 : i32
    return %c0_i32, %c0_i32_0 : i32, i32
  }
  func.func @transform_5(%arg0: i32) -> (i32, i32) {
    %c0_i32 = arith.constant 0 : i32
    %c0_i32_0 = arith.constant 0 : i32
    %c0_i32_1 = arith.constant 0 : i32
    return %c0_i32, %c0_i32_0 : i32, i32
  }
  func.func @transform_6(%arg0: i32) -> (i32, i32, i32) {
    %c0_i32 = arith.constant 0 : i32
    %c0_i32_0 = arith.constant 0 : i32
    %c0_i32_1 = arith.constant 0 : i32
    return %arg0, %c0_i32, %c0_i32_0 : i32, i32, i32
  }
}

</mosaic_0001>

<bundles_post_ra>
// kernel: tpu_custom_call.1
= control target key start
LH: loop header
LB: loop body
LE: loop exit
PB: predicated region body
PF: predicated region fallthrough
CT: control target
= control target key end

     0   :  { %11 = vsyncpa [#allocation3], 0  ;;  %s1623_s0 = inlined_call_operand.hbm [shape: bf16[2,16,128], index: 0, kind: input, shape index: {}]   ;;  %s1624_s1 = inlined_call_operand.hbm [shape: bf16[5,128,128], index: 1, kind: input, shape index: {}]   ;;  %s1625_s2 = inlined_call_operand.vmem [shape: f32[1,128], index: 2, kind: input, shape index: {}]   ;;  %s1626_s3 = inlined_call_operand.vmem [shape: s32[1,128], index: 3, kind: input, shape index: {}]   ;;  %s1627_s4 = inlined_call_operand.hbm [shape: bf16[128,128], index: 4, kind: input, shape index: {}]   ;;  %s1628_s5 = inlined_call_operand.vmem [shape: f32[1,128], index: 5, kind: input, shape index: {}]   ;;  %s1629_s6 = inlined_call_operand.hbm [shape: f32[2,1,128], index: 6, kind: output, shape index: {}]  }
   0x1   :  { %13 = vsyncpa [#allocation3 + $0x1], 0 }
   0x2   :  { %14 = vsyncpa [#allocation6], 0 }
   0x3   :  { %15 = vsyncpa [#allocation4], 0 }
   0x4   :  { %17 = vsyncpa [#allocation4 + $0x1], 0  ;;  %s1460_s21 = smov 0   ;;  %s1462_s22 = smov 0  }
   0x5   :  { %s1464_s23 = smov 0   ;;  %s1466_s24 = smov 0  }
   0x6 LB: > { %s1481_s25 = sadd.s32 4294967295, %s1419_s24   ;;  %s929_s26 = sadd.s32 4294967294, %s1419_s24   ;;  %s1419_s24 = sphi %s1466_s24, %s1643_s24   ;;  %s1415_s23 = sphi %s1464_s23, %s1642_s23   ;;  %s1411_s22 = sphi %s1462_s22, %s1641_s22   ;;  %s1407_s21 = sphi %s1460_s21, %s1640_s21  }
   0x7   : > { %p43_p0 = scmp.ne.s32.totalorder %s1411_s22, %s1407_s21  ;;  %p44_p1 = scmp.eq.s32.totalorder %s1481_s25, 0 }
   0x8   : > { %p172_p2 = scmp.eq.s32.totalorder %s1481_s25, 1  ;;  %p178_p3 = scmp.eq.s32.totalorder %s929_s26, 1 }
   0x9   : > { %p1490_p4 = por %p44_p1, %p43_p0  ;;  %p930_p5 = scmp.ge.s32.totalorder %s1419_s24, 1 }
   0xa   : > { %p1495_p6 = por %p178_p3, %p43_p0  ;;  %p185_p7 = scmp.lt.s32.totalorder %s1419_s24, 3 }
   0xb   : > { %s196_s7 = sshll.u32 %s1624_s1, 4  ;;  %s1421_s9 = smov [#allocation5]   ;;  %s197_s7 = int_to_ptr.hbm [resolvable:$true] %s196_s7 }
   0xc   : > { %p1503_p8 = pnand %p930_p5, %p185_p7  ;;  %s198_s10 = sshll.u32 %s1421_s9, 4  ;;  %s199_s10 = int_to_ptr.vmem [resolvable:$true] %s198_s10 }
   0xd   : > { %s216_s13 = sshll.u32 %s1627_s4, 4  ;;  %s1630_s14 = smov 64   ;;  %s217_s13 = int_to_ptr.hbm [resolvable:$true] %s216_s13 }
   0xe   : > { %p1201_p9 = pneg %p1503_p8  ;;  %s1631_s15 = smov 4  }
   0xf   : > { %s1424_s16 = smov [#allocation7]   ;;  %s1522_s18 = sadd.s32 1, %s1419_s24  }
  0x10   : > { %p1202_p10 = pnand %p1201_p9, %p44_p1  ;;  %s218_s17 = sshll.u32 %s1424_s16, 4  ;;  %s219_s17 = int_to_ptr.vmem [resolvable:$true] %s218_s17 }
  0x11   : > { %s30_s19 = sadd.s32 1, %s1415_s23  ;;  %s27_s20 = ssub.s32 %s1419_s24, %s1522_s18 }
  0x12   : > { %1204 = dma.hbm_to_vmem [thread:$0]  (!%p1202_p10), %s197_s7, 5120, %s199_s10, [#allocation6], %s1630_s14, %s1630_s14, %s1631_s15  }
  0x13   : > { %1207 = dma.hbm_to_vmem [thread:$0]  (!%p1202_p10), %s217_s13, 1024, %s219_s17, [#allocation6], %s1630_s14, %s1630_s14, %s1631_s15  }
  0x14   : > { %p37_p12 = scmp.ne.s32.totalorder %s1415_s23, %s1411_s22  ;;  %p28_p13 = scmp.eq.s32.totalorder %s27_s20, 0 }
  0x15   : > { %p38_p0 = scmp.eq.s32.totalorder %s1419_s24, 0  ;;  %p1218_p5 = scmp.lt.s32.totalorder %s1419_s24, 2 }
  0x16   : > { %p1532_p3 = por %p172_p2, %p37_p12  ;;  %s235_s30 = sand.u32 1, %s1415_s23  }
  0x17   : > { %s1538_s29 = scalar_select %p28_p13, %s1415_s23, %s30_s19  }
  0x18   : > { %p39_p7 = por %p38_p0, %p37_p12  ;;  %s934_s7 = sshll.u32 %s235_s30, 3 }
  0x19   : > { %s1139_s9 = sshll.u32 %s1419_s24, 3  ;;  %s239_s13 = scalar_lea.vmem [#allocation2], %s934_s7 }
  0x1a   : > { %s244_s12 = scalar_lea.hbm %s1623_s0, %s1139_s9  ;;  %s247_s16 = sshll.u32 %s239_s13, 4  ;;  %s248_s16 = int_to_ptr.vmem [resolvable:$true] %s247_s16 }
  0x1b   : > { %s245_s17 = sshll.u32 %s244_s12, 4  ;;  %p1545_p2 = pnand %p1218_p5, %p39_p7  ;;  %s246_s17 = int_to_ptr.hbm [resolvable:$true] %s245_s17 }
  0x1c   : > { %s236_s19 = scalar_lea.sflag [#allocation3], %s235_s30  ;;  %s1319_s14 = sshra.s32 %s246_s17, 4  ;;  %s1320_s14 = int_to_ptr.hbm [resolvable:$true] %s1319_s14 }
  0x1d   : > { %s1321_s15 = scalar_lea.hbm %s1320_s14, 8  ;;  %p1323_p10 = pneg %p1545_p2 }
  0x1e   : > { %p1322_p9 = scmp.ne.s32.totalorder %s1320_s14, %s1321_s15  ;;  %s1326_s10 = scalar_lea.hbm %s1623_s0, 16 }
  0x1f   : > { %p1327_p0 = scmp.lt.s32.totalorder %s1320_s14, %s1623_s0  ;;  %p1328_p5 = scmp.lt.s32.totalorder %s1326_s10, %s1321_s15 }
  0x20   : > { %p1324_p12 = pnand %p1323_p10, %p1322_p9 }
  0x21   : > { %p1329_p7 = por %p1328_p5, %p1327_p0 }
  0x22   : > { %p1325_p13 = pneg %p1324_p12 }
  0x24   : > { %p1330_p11 = pnand %p1329_p7, %p1325_p13 }
  0x26   : > { %1333 = shalt.err (!%p1330_p11)
}
  0x27   : > { %s1637_s30 = smov 4   ;;  %s1638_s13 = smov 64  }
  0x28   : > { %1211 = dma.hbm_to_vmem [thread:$0]  (!%p1545_p2), %s246_s17, 128, %s248_s16, %s236_s19, %s1638_s13, %s1638_s13, %s1637_s30  }
  0x29   : > { %259 = sbr.rel (%p1503_p8) target bundleno = 407 (0x197), region = 44  ;;  %s1565_s9 = sand.u32 (!%p1503_p8), 1, %s1411_s22  }
  0x2a   : > { %s938_s14 = sshll.u32 (!%p1503_p8), %s1565_s9, 3  ;;  %s262_s15 = scalar_lea.sflag (!%p1503_p8), [#allocation3], %s1565_s9 }
  0x2b   : > { %s1569_s7 = scalar_lea.vmem (!%p1503_p8), [#allocation2], %s938_s14 }
  0x2e   : > { %1394 = dma.done.wait (%p1490_p4), %s262_s15, 128  }
  0x2f   : > { %1396 = vsyncadd (%p1490_p4), %s262_s15, 4294967168 }
  0x30   : > { %1398 = dma.done.wait (%p44_p1), [#allocation6], 6144  }
  0x31   : > { %1400 = vsyncadd (%p44_p1), [#allocation6], 4294961152  ;;  %v1156_v0 = vld [vmem:[#allocation5 + $0x78] sm:$0xff]  ;;  %v1155_v3 = vld [vmem:[#allocation5 + $0x70] sm:$0xff]  ;;  %v409_v48 = vlaneseq  ;;  %s840_s10 = scalar_lea.hbm %s1629_s6, %s1481_s25  ;;  %s303_s30 = scalar_lea.vmem [#allocation8], %s1565_s9 }
  0x32   : > { %v1164_v1 = vld [vmem:[#allocation5 + $0xb8] sm:$0xff]  ;;  %393 = vmatpush.bf16.msra.mxu0 %v1156_v0  ;;  %v1163_v4 = vld [vmem:[#allocation5 + $0xb0] sm:$0xff]  ;;  %v1154_v8 = vld [vmem:[#allocation5 + $0x68] sm:$0xff]  ;;  %s842_s13 = sshll.u32 %s303_s30, 4  ;;  %s844_s14 = sshll.u32 %s840_s10, 4  ;;  %s843_s13 = int_to_ptr.vmem [resolvable:$true] %s842_s13  ;;  %s845_s14 = int_to_ptr.hbm [resolvable:$true] %s844_s14 }
  0x33   : > { %v1172_v2 = vld [vmem:[#allocation5 + $0xf8] sm:$0xff]  ;;  %541 = vmatpush.bf16.msra.mxu2 %v1164_v1  ;;  %v1171_v6 = vld [vmem:[#allocation5 + $0xf0] sm:$0xff]  ;;  %v1162_v9 = vld [vmem:[#allocation5 + $0xa8] sm:$0xff]  ;;  %v410_v53 = vshrl.u32 %v409_v48, 7  ;;  %s832_s15 = scalar_lea.sflag [#allocation4], %s1565_s9  ;;  %s1369_s16 = scalar_lea.hbm %s1629_s6, 2 }
  0x34   : > { %v1148_v5 = vld [vmem:[#allocation5 + $0x38] sm:$0xff]  ;;  %627 = vmatpush.bf16.msra.mxu3 %v1172_v2  ;;  %v1147_v7 = vld [vmem:[#allocation5 + $0x30] sm:$0xff]  ;;  %v1170_v10 = vld [vmem:[#allocation5 + $0xe8] sm:$0xff] }
  0x35   : > { %462 = vmatpush.bf16.msra.mxu1 %v1148_v5  ;;  %v1146_v11 = vld [vmem:[#allocation5 + $0x28] sm:$0xff]  ;;  %v1153_v12 = vld [vmem:[#allocation5 + $0x60] sm:$0xff]  ;;  %v1152_v16 = vld [vmem:[#allocation5 + $0x58] sm:$0xff]  ;;  %vm411_vm0 = vcmp.lt.s32.totalorder %v410_v53, 7  ;;  %vm557_vm1 = vcmp.lt.s32.totalorder %v410_v53, 6  ;;  %vm643_vm2 = vcmp.lt.s32.totalorder %v410_v53, 5 }
  0x36   : > { %394 = vmatpush.bf16.msra.mxu0 %v1155_v3  ;;  %v1161_v13 = vld [vmem:[#allocation5 + $0xa0] sm:$0xff]  ;;  %v1160_v17 = vld [vmem:[#allocation5 + $0x98] sm:$0xff]  ;;  %v1151_v20 = vld [vmem:[#allocation5 + $0x50] sm:$0xff]  ;;  %vm729_vm3 = vcmp.lt.s32.totalorder %v410_v53, 4 }
  0x37   : > { %542 = vmatpush.bf16.msra.mxu2 %v1163_v4  ;;  %v1169_v14 = vld [vmem:[#allocation5 + $0xe0] sm:$0xff]  ;;  %v1168_v18 = vld [vmem:[#allocation5 + $0xd8] sm:$0xff]  ;;  %v1159_v21 = vld [vmem:[#allocation5 + $0x90] sm:$0xff] }
  0x38   : > { %628 = vmatpush.bf16.msra.mxu3 %v1171_v6  ;;  %v1145_v15 = vld [vmem:[#allocation5 + $0x20] sm:$0xff]  ;;  %v1144_v19 = vld [vmem:[#allocation5 + $0x18] sm:$0xff]  ;;  %v1167_v22 = vld [vmem:[#allocation5 + $0xd0] sm:$0xff] }
  0x39   : > { %463 = vmatpush.bf16.msra.mxu1 %v1147_v7  ;;  %v1143_v23 = vld [vmem:[#allocation5 + $0x10] sm:$0xff]  ;;  %v1150_v24 = vld [vmem:[#allocation5 + $0x48] sm:$0xff]  ;;  %v1149_v28 = vld [vmem:[#allocation5 + $0x40] sm:$0xff] }
  0x3a   : > { %395 = vmatpush.bf16.msra.mxu0 %v1154_v8  ;;  %v1158_v25 = vld [vmem:[#allocation5 + $0x88] sm:$0xff]  ;;  %v1157_v29 = vld [vmem:[#allocation5 + $0x80] sm:$0xff]  ;;  %v1180_v30 = vld [vmem:[#allocation5 + $0x138] sm:$0xff] }
  0x3b   : > { %543 = vmatpush.bf16.msra.mxu2 %v1162_v9  ;;  %v1166_v26 = vld [vmem:[#allocation5 + $0xc8] sm:$0xff]  ;;  %v1165_v31 = vld [vmem:[#allocation5 + $0xc0] sm:$0xff]  ;;  %v1140_v33 = vld [vmem:[%s1569_s7] sm:$0xff]  ;;  %s1363_s7 = sshra.s32 %s845_s14, 4  ;;  %s1364_s7 = int_to_ptr.hbm [resolvable:$true] %s1363_s7 }
  0x3c   : > { %629 = vmatpush.bf16.msra.mxu3 %v1170_v10  ;;  %v1142_v27 = vld [vmem:[#allocation5 + $0x8] sm:$0xff]  ;;  %v1141_v32 = vld [vmem:[#allocation5] sm:$0xff]  ;;  %v1179_v34 = vld [vmem:[#allocation5 + $0x130] sm:$0xff]  ;;  %s1365_s27 = scalar_lea.hbm %s1364_s7, 1  ;;  %p1370_p11 = scmp.lt.s32.totalorder %s1364_s7, %s1629_s6 }
  0x3d   : > { %464 = vmatpush.bf16.msra.mxu1 %v1146_v11  ;;  %v1178_v35 = vld [vmem:[#allocation5 + $0x128] sm:$0xff]  ;;  %v1177_v36 = vld [vmem:[#allocation5 + $0x120] sm:$0xff]  ;;  %v1176_v37 = vld [vmem:[#allocation5 + $0x118] sm:$0xff]  ;;  %p1366_p1 = scmp.ne.s32.totalorder %s1364_s7, %s1365_s27  ;;  %p1371_p2 = scmp.lt.s32.totalorder %s1369_s16, %s1365_s27 }
  0x3e   : > { %396 = vmatpush.bf16.msra.mxu0 %v1153_v12  ;;  %v1175_v38 = vld [vmem:[#allocation5 + $0x110] sm:$0xff]  ;;  %v1174_v39 = vld [vmem:[#allocation5 + $0x108] sm:$0xff]  ;;  %v1173_v40 = vld [vmem:[#allocation5 + $0x100] sm:$0xff]  ;;  %v734_v12 = vadd.s32 8, %v410_v53 }
  0x3f   : > { %544 = vmatpush.bf16.msra.mxu2 %v1161_v13  ;;  %v1188_v41 = vld [vmem:[#allocation7 + $0x38] sm:$0xff]  ;;  %v1187_v42 = vld [vmem:[#allocation7 + $0x30] sm:$0xff]  ;;  %v1186_v43 = vld [vmem:[#allocation7 + $0x28] sm:$0xff]  ;;  %p1367_p4 = pnand %p1366_p1, %p1532_p3  ;;  %p1372_p9 = por %p1371_p2, %p1370_p11 }
  0x40   : > { %630 = vmatpush.bf16.msra.mxu3 %v1169_v14  ;;  %v1185_v45 = vld [vmem:[#allocation7 + $0x20] sm:$0xff]  ;;  %v1184_v47 = vld [vmem:[#allocation7 + $0x18] sm:$0xff]  ;;  %v1183_v49 = vld [vmem:[#allocation7 + $0x10] sm:$0xff] }
  0x41   : > { %465 = vmatpush.bf16.msra.mxu1 %v1145_v15  ;;  %v1182_v54 = vld [vmem:[#allocation7 + $0x8] sm:$0xff]  ;;  %v1181_v58 = vld [vmem:[#allocation7] sm:$0xff]  ;;  %v1258_v13 = vld [vmem:[%s1626_s3] ss:$0 sm:$0xff]  ;;  %p1368_p8 = pneg %p1367_p4 }
  0x42   : > { %397 = vmatpush.bf16.msra.mxu0 %v1152_v16  ;;  %vm737_vm4 = vcmp.lt.s32.totalorder %v410_v53, %v1258_v13  ;;  %vm738_vm5 = vcmp.lt.s32.totalorder %v734_v12, %v1258_v13 }
  0x43   : > { %545 = vmatpush.bf16.msra.mxu2 %v1160_v17  ;;  %p1373_p10 = pnand %p1372_p9, %p1368_p8 }
  0x44   : > { %631 = vmatpush.bf16.msra.mxu3 %v1168_v18 }
  0x45   : > { %466 = vmatpush.bf16.msra.mxu1 %v1144_v19 }
  0x46   : > { %398 = vmatpush.bf16.msra.mxu0 %v1151_v20 }
  0x47   : > { %546 = vmatpush.bf16.msra.mxu2 %v1159_v21 }
  0x48   : > { %632 = vmatpush.bf16.msra.mxu3 %v1167_v22 }
  0x49   : > { %467 = vmatpush.bf16.msra.mxu1 %v1143_v23 }
  0x4a   : > { %399 = vmatpush.bf16.msra.mxu0 %v1150_v24 }
  0x4b   : > { %547 = vmatpush.bf16.msra.mxu2 %v1158_v25 }
  0x4c   : > { %633 = vmatpush.bf16.msra.mxu3 %v1166_v26 }
  0x4d   : > { %468 = vmatpush.bf16.msra.mxu1 %v1142_v27 }
  0x4e   : > { %400 = vmatpush.bf16.msra.mxu0 %v1149_v28 }
  0x4f   : > { %548 = vmatpush.bf16.msra.mxu2 %v1157_v29 }
  0x50   : > { %634 = vmatpush.bf16.msra.mxu3 %v1165_v31  ;;  %v748_v31 = vld [vmem:[%s1625_s2] sm:$0x1] }
  0x51   : > { %469 = vmatpush.bf16.msra.mxu1 %v1141_v32  ;;  %401 = vmatmul.bf16.vlgmr.msra.gmra.mxu0 %v1140_v33 }
  0x52   : > { %713 = vmatpush.bf16.msrb.mxu0 %v1180_v30  ;;  %549 = vmatmul.bf16.vlgmr.msra.gmra.mxu2 %v1140_v33 }
  0x53   : > { %635 = vmatmul.bf16.vlgmr.msra.gmra.mxu3 %v1140_v33 }
  0x54   : > { %470 = vmatmul.bf16.vlgmr.msra.gmra.mxu1 %v1140_v33 }
  0x55   : > { %817 = vmatpush.bf16.msrb.mxu1 %v1188_v41 }
  0x56   : > { %714 = vmatpush.bf16.msrb.mxu0 %v1179_v34 }
  0x59   : > { %818 = vmatpush.bf16.msrb.mxu1 %v1187_v42 }
  0x5a   : > { %715 = vmatpush.bf16.msrb.mxu0 %v1178_v35 }
  0x5d   : > { %819 = vmatpush.bf16.msrb.mxu1 %v1186_v43 }
  0x5e   : > { %716 = vmatpush.bf16.msrb.mxu0 %v1177_v36  ;;  %v768_v36 = vld [vmem:[%s1628_s5] sm:$0x1] }
  0x61   : > { %820 = vmatpush.bf16.msrb.mxu1 %v1185_v45 }
  0x62   : > { %717 = vmatpush.bf16.msrb.mxu0 %v1176_v37 }
  0x65   : > { %821 = vmatpush.bf16.msrb.mxu1 %v1184_v47 }
  0x66   : > { %718 = vmatpush.bf16.msrb.mxu0 %v1175_v38 }
  0x69   : > { %822 = vmatpush.bf16.msrb.mxu1 %v1183_v49 }
  0x6a   : > { %719 = vmatpush.bf16.msrb.mxu0 %v1174_v39 }
  0x6d   : > { %823 = vmatpush.bf16.msrb.mxu1 %v1182_v54 }
  0x6e   : > { %720 = vmatpush.bf16.msrb.mxu0 %v1173_v40 }
  0x71   : > { %721 = vmatmul.bf16.vlgmr.msrb.gmra.mxu0 %v1140_v33  ;;  %824 = vmatpush.bf16.msrb.mxu1 %v1181_v58 }
  0xce   : > { %v402_v44 = vpop.f32.mrf.mxu0 }
  0xcf   : > { %v407_v55 = vrot.slane %v402_v44, 1 }
  0xd1   : > { %v471_v50 = vpop.f32.mrf.mxu1 }
  0xd5   : > { %v550_v46 = vpop.f32.mrf.mxu2 }
  0xd6   : > { %v636_v51 = vpop.f32.mrf.mxu3  ;;  %v404_v52 = vpop.f32.mrf.mxu0  ;;  %v555_v59 = vrot.slane %v550_v46, 2 }
  0xd7   : > { %v408_v56 = vrot.slane %v404_v52, 1  ;;  %v641_v4 = vrot.slane %v636_v51, 3 }
  0xd9   : > { %v412_v61 = vsel %vm411_vm0, %v407_v55, %v408_v56  ;;  %v413_v62 = vsel %vm411_vm0, %v408_v56, %v407_v55  ;;  %v473_v63 = vpop.f32.mrf.mxu1 }
  0xda   : > { %v472_v2 = vadd.f32 %v471_v50, %v412_v61  ;;  %v474_v3 = vadd.f32 %v473_v63, %v413_v62 }
  0xdd   : > { %v552_v57 = vpop.f32.mrf.mxu2 }
  0xde   : > { %v556_v60 = vrot.slane %v552_v57, 2  ;;  %v638_v0 = vpop.f32.mrf.mxu3 }
  0xdf   : > { %v642_v7 = vrot.slane %v638_v0, 3 }
  0xe0   : > { %v558_v5 = vsel %vm557_vm1, %v555_v59, %v556_v60  ;;  %v559_v6 = vsel %vm557_vm1, %v556_v60, %v555_v59 }
  0xe1   : > { %v561_v8 = vadd.f32 %v559_v6, %v474_v3  ;;  %v560_v9 = vadd.f32 %v558_v5, %v472_v2  ;;  %v644_v10 = vsel %vm643_vm2, %v641_v4, %v642_v7  ;;  %v645_v11 = vsel %vm643_vm2, %v642_v7, %v641_v4 }
  0xe3   : > { %v646_v17 = vadd.f32 %v644_v10, %v560_v9  ;;  %v647_v18 = vadd.f32 %v645_v11, %v561_v8 }
  0xee   : > { %v722_v1 = vpop.f32.mrf.mxu0 }
  0xef   : > { %v727_v15 = vrot.slane %v722_v1, 4 }
  0xf6   : > { %v724_v14 = vpop.f32.mrf.mxu0 }
  0xf7   : > { %v728_v16 = vrot.slane %v724_v14, 4 }
  0xf9   : > { %v730_v19 = vsel %vm729_vm3, %v727_v15, %v728_v16  ;;  %v731_v20 = vsel %vm729_vm3, %v728_v16, %v727_v15 }
  0xfa   : > { %v732_v21 = vadd.f32 %v730_v19, %v646_v17  ;;  %v733_v22 = vadd.f32 %v731_v20, %v647_v18 }
  0xfc   : > { %v739_v23 = vsel %vm737_vm4, %v732_v21, -inf  ;;  %v740_v24 = vsel %vm738_vm5, %v733_v22, -inf }
  0xfd   : > { %v741_v25 = vmax.f32 %v739_v23, %v740_v24 }
  0xff   : > { %v742_v26 = vrot.slane %v741_v25, 4 }
 0x101   : > { %v743_v27 = vmax.f32 %v741_v25, %v742_v26 }
 0x103   : > { %v744_v28 = vrot.slane %v743_v27, 2 }
 0x105   : > { %v745_v29 = vmax.f32 %v743_v27, %v744_v28 }
 0x107   : > { %v746_v30 = vrot.slane %v745_v29, 1 }
 0x109   : > { %v747_v32 = vmax.f32 %v745_v29, %v746_v30 }
 0x10b   : > { %v749_v33 = vadd.f32 %v748_v31, %v747_v32 }
 0x10d   : > { %v750_v34 = vmax.f32 %v749_v33, 0.0 }
 0x10f   : > { %v751_v35 = vpack.c.bf16 %v750_v34, %v750_v34 }
 0x111   : > { %825 = vmatmul.bf16.vlgmr.msrb.gmra.mxu1 %v751_v35 }
 0x18e   : > { %v826_v37 = vpop.f32.mrf.mxu1 }
 0x18f   : > { %v827_v38 = vadd.f32 %v826_v37, %v768_v36 }
 0x191   : > { %830 = vst [vmem:[%s303_s30] sm:$0x1] %v827_v38 }
 0x192   : > { %1376 = shalt.err (!%p1373_p10)
}
 0x193   : > { %1199 = dma.vmem_to_hbm [thread:$0]  (%p1532_p3), %s843_s13, 16, %s845_s14, %s832_s15  }
 0x196   : > { %v828_v39 = vpop.f32.mrf.mxu1 }
 0x197 PF: > { %s856_s9 = sand.u32 1, %s1407_s21   ;;  %p1639_p12 = scmp.ge.s32.totalorder %s1419_s24, 2 }
 0x198   : > { %s857_s19 = scalar_lea.sflag [#allocation4], %s856_s9 }
 0x199   : > { %p1213_p13 = pnand %p1639_p12, %p1495_p6 }
 0x19b   : > { %p1214_p0 = pneg %p1213_p13 }
 0x19d   : > { %1402 = dma.done.wait (%p1214_p0), %s857_s19, 16  }
 0x19e   : > { %1404 = vsyncadd (%p1214_p0), %s857_s19, 4294967280  ;;  %p20_p5 = scmp.ge.s32.totalorder %s1522_s18, 4   ;;  %s1640_s21 = smov %s1411_s22 }
 0x19f   : > { %s1641_s22 = smov %s1415_s23  ;;  %s1642_s23 = smov %s1538_s29 }
 0x1a0   : > { %s1643_s24 = smov %s1522_s18  ;;  %22 = sbr.rel (!%p20_p5) target bundleno = 6 (0x6), region = 101 }
 0x1a5   :  { %862 = vsyncpa [#allocation3], 1 }
 0x1a6   :  { %864 = vsyncpa [#allocation3 + $0x1], 1 }
 0x1a7   :  { %865 = vsyncpa [#allocation6], 1 }
 0x1a8   :  { %866 = vsyncpa [#allocation4], 1 }
 0x1a9   :  { %868 = vsyncpa [#allocation4 + $0x1], 1 }

</bundles_post_ra>
